<compile_context>
chip_gen: v7x
topology: tpu7x:2x2x1
jax: 0.10.0
libtpu: 0.0.40
codegen_flags: <defaults>
</compile_context>

<pallas_src>
import functools

import jax
import jax.numpy as jnp
from jax import lax
from jax.experimental import pallas as pl
from jax.experimental.pallas import tpu as pltpu


def _round_up(x, m):
    return (x + m - 1) // m * m


# ----------------------------- Pallas kernels ------------------------------

def _stats_kernel(patches_ref, w_ref, sum_ref, sq_ref):
    """Pass 1 (stats only): y = W_phase @ patches_phase tile on the MXU (bf16 in,
    f32 acc); per-channel sum / sum-of-squares accumulate into per-phase resident
    (C_pad, 1) blocks.  No y writeback."""
    @pl.when(pl.program_id(1) == 0)
    def _():
        sum_ref[...] = jnp.zeros_like(sum_ref)
        sq_ref[...] = jnp.zeros_like(sq_ref)

    y = jnp.dot(w_ref[0], patches_ref[0],
                preferred_element_type=jnp.float32)          # (C_pad, tile_p) f32
    sum_ref[0] += jnp.sum(y, axis=1, keepdims=True)          # (C_pad, 1)
    sq_ref[0] += jnp.sum(y * y, axis=1, keepdims=True)       # (C_pad, 1)


def _bn_act_kernel(scale_ref, shift_ref, patches_ref, w_ref, out_ref, *, neg_slope):
    """Pass 2: recompute the matmul, apply folded BatchNorm (y*scale + shift) and
    LeakyReLU; store channels-on-sublane / positions-on-lane (lane dense)."""
    y = jnp.dot(w_ref[0], patches_ref[0],
                preferred_element_type=jnp.float32)          # (C_pad, tile_p) f32
    z = y * scale_ref[...] + shift_ref[...]                  # (C_pad,1) lane-broadcast
    z = jnp.where(z >= 0, z, neg_slope * z)
    out_ref[0] = z[:out_ref.shape[1], :].astype(out_ref.dtype)


# ------------------------------- wrapper ------------------------------------

def deconv_block_forward(x, weight, gamma, beta, *, stride, pad, output_pad,
                         eps=1e-5, neg_slope=0.2, tile_p=4096):
    """x: (N, Cin, H, W); weight: (Cin, Cout, ks, ks) (torch ConvTranspose2d layout)."""
    N, Cin, H, W = x.shape
    Cin_w, Cout, ks, ks2 = weight.shape
    assert Cin == Cin_w and ks == ks2
    assert tile_p % 128 == 0
    s = stride

    Ho = (H - 1) * s - 2 * pad + ks + output_pad
    Wo = (W - 1) * s - 2 * pad + ks + output_pad

    # --- sub-pixel (phase) decomposition geometry -------------------------------
    # For output index o of phase r (= (o + pad) mod s):  taps k = r + s*t,
    # t = 0..T-1, reading input index q - t with q = (o + pad) // s.
    T = -(-ks // s)                       # ceil(ks / s)
    n_ph = s * s
    K = Cin * T * T

    C_pad = _round_up(Cout, 128)          # keep 128 (do NOT widen to 256)
    K_pad = _round_up(K, 128)
    Cout_p8 = _round_up(Cout, 8)

    def geom(r, size_in, size_out):
        o0 = (r - pad) % s                              # first output index of phase
        n_out = (size_out - 1 - o0) // s + 1            # outputs in this phase
        m0 = (o0 + pad) // s                            # input index of tap 0 at j=0
        top = max(0, (T - 1) - m0)
        bot = max(0, m0 + n_out - 1 - (size_in - 1))
        return o0, n_out, m0, top, bot

    geoms = []
    top_h = bot_h = top_w = bot_w = 0
    for rh in range(s):
        for rw in range(s):
            gh, gw = geom(rh, H, Ho), geom(rw, W, Wo)
            geoms.append((gh, gw))
            top_h, bot_h = max(top_h, gh[3]), max(bot_h, gh[4])
            top_w, bot_w = max(top_w, gw[3]), max(bot_w, gw[4])

    P_list = [N * gh[1] * gw[1] for gh, gw in geoms]
    P_max = max(P_list)
    tile_eff = min(tile_p, _round_up(P_max, 128))
    P_pad = _round_up(P_max, tile_eff)
    n_tiles = P_pad // tile_eff

    # --- K-major patch construction (XLA glue, (ks/s)^2 duplication, no zeros) ---
    x_t = jnp.transpose(x, (1, 0, 2, 3))                        # (Cin, N, H, W)
    x_p = jnp.pad(x_t, ((0, 0), (0, 0), (top_h, bot_h), (top_w, bot_w)))

    patch_phases, w_phases = [], []
    for ph, (gh, gw) in enumerate(geoms):
        rh, rw = ph // s, ph % s
        _, nr, m0h, _, _ = gh
        _, nc, m0w, _, _ = gw
        shards = []
        for a in range(T):
            hs = m0h - a + top_h
            for b in range(T):
                ws = m0w - b + top_w
                shards.append(x_p[:, :, hs:hs + nr, ws:ws + nc])  # (Cin,N,nr,nc)
        pt = jnp.stack(shards, axis=1)                            # (Cin,T*T,N,nr,nc)
        pt = pt.reshape(Cin * T * T, N * nr * nc)                 # (K, P_ph)
        pt = jnp.pad(pt, ((0, K_pad - K), (0, P_pad - N * nr * nc)))
        patch_phases.append(pt)

        w_sub = weight[:, :, rh::s, rw::s]                        # (Cin,Cout,Th,Tw)
        th_, tw_ = w_sub.shape[2], w_sub.shape[3]
        w_sub = jnp.pad(w_sub, ((0, 0), (0, 0), (0, T - th_), (0, T - tw_)))
        w_mat = jnp.transpose(w_sub, (1, 0, 2, 3)).reshape(Cout, K)  # K order (ci,th,tw)
        w_phases.append(jnp.pad(w_mat, ((0, C_pad - Cout), (0, K_pad - K))))

    patches = jnp.stack(patch_phases, axis=0).astype(jnp.bfloat16)  # (n_ph,K_pad,P_pad)
    w_all = jnp.stack(w_phases, axis=0).astype(jnp.bfloat16)        # (n_ph,C_pad,K_pad)

    vmem_limit = 32 * 1024 * 1024

    # ---- pass 1: per-phase batch statistics (stats only, no y writeback) -------
    sum_ph, sq_ph = pl.pallas_call(
        _stats_kernel,
        out_shape=(jax.ShapeDtypeStruct((n_ph, C_pad, 1), jnp.float32),
                   jax.ShapeDtypeStruct((n_ph, C_pad, 1), jnp.float32)),
        grid=(n_ph, n_tiles),
        in_specs=[
            pl.BlockSpec((1, K_pad, tile_eff), lambda p, i: (p, 0, i)),
            pl.BlockSpec((1, C_pad, K_pad), lambda p, i: (p, 0, 0)),
        ],
        out_specs=(
            pl.BlockSpec((1, C_pad, 1), lambda p, i: (p, 0, 0)),
            pl.BlockSpec((1, C_pad, 1), lambda p, i: (p, 0, 0)),
        ),
        compiler_params=pltpu.CompilerParams(
            dimension_semantics=("parallel", "arbitrary"),
            vmem_limit_bytes=vmem_limit),
    )(patches, w_all)

    # ---- fold BN into one per-channel scale/shift (tiny O(C) XLA math) ---------
    # Zero-padded rows / channels contributed 0 to the sums; divide by true count.
    # NOTE: variance via E[x^2]-E[x]^2 in f32 (sufficient here; Welford if needed).
    count = float(N * Ho * Wo)
    sums = jnp.sum(sum_ph[..., 0], axis=0)                       # (C_pad,)
    sqs = jnp.sum(sq_ph[..., 0], axis=0)
    mean = sums / count
    var = jnp.maximum(sqs / count - mean * mean, 0.0)
    inv_std = lax.rsqrt(var + eps)
    gamma_p = jnp.pad(gamma.astype(jnp.float32), (0, C_pad - Cout))
    beta_p = jnp.pad(beta.astype(jnp.float32), (0, C_pad - Cout))
    scale = (gamma_p * inv_std).reshape(C_pad, 1)
    shift = (beta_p - mean * gamma_p * inv_std).reshape(C_pad, 1)

    # ---- pass 2: recompute matmul, BN + LeakyReLU, channels-on-sublane output --
    kernel2 = functools.partial(_bn_act_kernel, neg_slope=neg_slope)
    out_ph = pl.pallas_call(
        kernel2,
        out_shape=jax.ShapeDtypeStruct((n_ph, Cout_p8, P_pad), jnp.float32),
        grid=(n_ph, n_tiles),
        in_specs=[
            pl.BlockSpec((C_pad, 1), lambda p, i: (0, 0)),
            pl.BlockSpec((C_pad, 1), lambda p, i: (0, 0)),
            pl.BlockSpec((1, K_pad, tile_eff), lambda p, i: (p, 0, i)),
            pl.BlockSpec((1, C_pad, K_pad), lambda p, i: (p, 0, 0)),
        ],
        out_specs=pl.BlockSpec((1, Cout_p8, tile_eff), lambda p, i: (p, 0, i)),
        compiler_params=pltpu.CompilerParams(
            dimension_semantics=("parallel", "parallel"),
            vmem_limit_bytes=vmem_limit),
    )(scale, shift, patches, w_all)

    # ---- interleave the s*s phase outputs back into (N, Cout, Ho, Wo) ----------
    out = jnp.zeros((N, Cout, Ho, Wo), jnp.float32)
    for ph, (gh, gw) in enumerate(geoms):
        oh0, nr = gh[0], gh[1]
        ow0, nc = gw[0], gw[1]
        blk = out_ph[ph, :Cout, :N * nr * nc].reshape(Cout, N, nr, nc)
        blk = jnp.transpose(blk, (1, 0, 2, 3))                   # (N, Cout, nr, nc)
        out = out.at[:, :, oh0:oh0 + s * nr:s, ow0:ow0 + s * nc:s].set(blk)
    return out


# ------------------------------ reference -----------------------------------

def _reference(x, weight, gamma, beta, *, stride, pad, output_pad,
               eps=1e-5, neg_slope=0.2):
    """Pure-JAX reference matching PyTorch semantics (train-mode BatchNorm)."""
    ks = weight.shape[2]
    w_flip = weight[:, :, ::-1, ::-1].transpose(1, 0, 2, 3)      # (Cout, Cin, ks, ks)
    y = lax.conv_general_dilated(
        x, w_flip, window_strides=(1, 1),
        padding=[(ks - 1 - pad, ks - 1 - pad + output_pad)] * 2,
        lhs_dilation=(stride, stride),
        dimension_numbers=('NCHW', 'OIHW', 'NCHW'))
    mean = y.mean(axis=(0, 2, 3), keepdims=True)
    var = ((y - mean) ** 2).mean(axis=(0, 2, 3), keepdims=True)
    z = (y - mean) * lax.rsqrt(var + eps)
    z = z * gamma.reshape(1, -1, 1, 1) + beta.reshape(1, -1, 1, 1)
    return jnp.where(z >= 0, z, neg_slope * z)


if __name__ == "__main__":
    # DeConvBlock(ni=4, no=8, ks=4, stride=2) -> pad = ks//2//stride = 1,
    # output_pad = 0, use_bn=True (batchnorm, training mode), LeakyReLU(0.2).
    ni, no, ks, stride = 4, 8, 4, 2
    pad = ks // 2 // stride
    output_pad = 0

    key = jax.random.PRNGKey(0)
    kx, kw, kg, kb = jax.random.split(key, 4)

    N, H, W = 2, 16, 16
    x = jax.random.normal(kx, (N, ni, H, W), dtype=jnp.float32)
    # ConvTranspose2d weight layout: (in_channels, out_channels, kH, kW), bias=False
    weight = jax.random.normal(kw, (ni, no, ks, ks), dtype=jnp.float32) * 0.1
    gamma = 0.5 + jax.random.uniform(kg, (no,), dtype=jnp.float32)
    beta = jax.random.normal(kb, (no,), dtype=jnp.float32) * 0.1

    # tile_p=256 with per-phase P = 2*16*16 = 512 -> grid (4 phases, 2 tiles),
    # exercising the pipelined P tiling and the per-phase resident accumulators.
    out = deconv_block_forward(x, weight, gamma, beta,
                               stride=stride, pad=pad, output_pad=output_pad,
                               tile_p=256)
    out = jax.block_until_ready(out)

    ref = _reference(x, weight, gamma, beta,
                     stride=stride, pad=pad, output_pad=output_pad)
    H_out = (H - 1) * stride - 2 * pad + ks + output_pad
    W_out = (W - 1) * stride - 2 * pad + ks + output_pad
    assert out.shape == (N, no, H_out, W_out)
    # bf16 MXU operands (f32 accumulation / BN math) -> looser tolerance than f32.
    max_err = float(jnp.max(jnp.abs(out - ref)))
    assert jnp.allclose(out, ref, atol=3e-2, rtol=3e-2), max_err

    print("KERNEL_OK")
</pallas_src>

<mosaic_0001>
module attributes {stable_mosaic.version = 11 : i64} {
  func.func @_stats_kernel(%arg0: i32, %arg1: i32, %arg2: memref<1x128x256xbf16, #tpu.memory_space<vmem>>, %arg3: memref<1x128x128xbf16, #tpu.memory_space<vmem>>, %arg4: memref<1x128x1xf32, #tpu.memory_space<vmem>>, %arg5: memref<1x128x1xf32, #tpu.memory_space<vmem>>) attributes {dimension_semantics = [#tpu.dimension_semantics<parallel>, #tpu.dimension_semantics<arbitrary>], iteration_bounds = array<i64: 4, 2>, scalar_prefetch = 0 : i64, scratch_operands = 0 : i64, tpu.core_type = #tpu.core_type<tc>, window_params = [{transform_indices = @transform_0, window_bounds = array<i64: 1, 128, 256>}, {transform_indices = @transform_1, window_bounds = array<i64: 1, 128, 128>}, {transform_indices = @transform_2, window_bounds = array<i64: 1, 128, 1>}, {transform_indices = @transform_3, window_bounds = array<i64: 1, 128, 1>}]} {
    %c0_i32 = arith.constant 0 : i32
    %0 = arith.cmpi eq, %arg1, %c0_i32 : i32
    %1 = arith.extui %0 : i1 to i32
    %c0_i32_0 = arith.constant 0 : i32
    %2 = arith.cmpi ne, %1, %c0_i32_0 : i32
    scf.if %2 {
      %cst_20 = arith.constant 0.000000e+00 : f32
      %25 = vector.broadcast %cst_20 : f32 to vector<1x128x1xf32>
      %c0_21 = arith.constant 0 : index
      %c0_22 = arith.constant 0 : index
      %c0_23 = arith.constant 0 : index
      %26 = vector.load %arg4[%c0_21, %c0_22, %c0_23] : memref<1x128x1xf32, #tpu.memory_space<vmem>>, vector<1x128x1xf32>
      tpu.vector_store %arg4[%c0_21, %c0_22, %c0_23], %25 {strides = array<i32>} : memref<1x128x1xf32, #tpu.memory_space<vmem>>, vector<1x128x1xf32>,
      %cst_24 = arith.constant 0.000000e+00 : f32
      %27 = vector.broadcast %cst_24 : f32 to vector<1x128x1xf32>
      %c0_25 = arith.constant 0 : index
      %c0_26 = arith.constant 0 : index
      %c0_27 = arith.constant 0 : index
      %28 = vector.load %arg5[%c0_25, %c0_26, %c0_27] : memref<1x128x1xf32, #tpu.memory_space<vmem>>, vector<1x128x1xf32>
      tpu.vector_store %arg5[%c0_25, %c0_26, %c0_27], %27 {strides = array<i32>} : memref<1x128x1xf32, #tpu.memory_space<vmem>>, vector<1x128x1xf32>,
    } else {
    }
    %c0 = arith.constant 0 : index
    %c0_1 = arith.constant 0 : index
    %c0_2 = arith.constant 0 : index
    %3 = vector.load %arg3[%c0, %c0_1, %c0_2] : memref<1x128x128xbf16, #tpu.memory_space<vmem>>, vector<1x128x128xbf16>
    %4 = vector.shape_cast %3 : vector<1x128x128xbf16> to vector<128x128xbf16>
    %c0_3 = arith.constant 0 : index
    %c0_4 = arith.constant 0 : index
    %c0_5 = arith.constant 0 : index
    %5 = vector.load %arg2[%c0_3, %c0_4, %c0_5] : memref<1x128x256xbf16, #tpu.memory_space<vmem>>, vector<1x128x256xbf16>
    %6 = vector.shape_cast %5 : vector<1x128x256xbf16> to vector<128x256xbf16>
    %cst = arith.constant dense<0.000000e+00> : vector<128x256xf32>
    %7 = tpu.matmul %4, %6, %cst {dimension_numbers = #tpu.dot_dimension_numbers<[1], [0], [0], [1], [0, 0, 1, 1], [], []>} : vector<128x128xbf16>, vector<128x256xbf16>, vector<128x256xf32> -> vector<128x256xf32>
    %c0_6 = arith.constant 0 : index
    %c0_7 = arith.constant 0 : index
    %c0_8 = arith.constant 0 : index
    %8 = vector.load %arg4[%c0_6, %c0_7, %c0_8] : memref<1x128x1xf32, #tpu.memory_space<vmem>>, vector<1x128x1xf32>
    %9 = vector.shape_cast %8 : vector<1x128x1xf32> to vector<128x1xf32>
    %cst_9 = arith.constant dense<0.000000e+00> : vector<128xf32>
    %10 = vector.multi_reduction <add>, %7, %cst_9 [1] : vector<128x256xf32> to vector<128xf32>
    %11 = vector.shape_cast %10 : vector<128xf32> to vector<128x1xf32>
    %12 = arith.addf %9, %11 : vector<128x1xf32>
    %c0_10 = arith.constant 0 : index
    %c0_11 = arith.constant 0 : index
    %c0_12 = arith.constant 0 : index
    %13 = vector.load %arg4[%c0_10, %c0_11, %c0_12] : memref<1x128x1xf32, #tpu.memory_space<vmem>>, vector<1x128x1xf32>
    %14 = vector.shape_cast %13 : vector<1x128x1xf32> to vector<128x1xf32>
    %15 = vector.shape_cast %12 : vector<128x1xf32> to vector<1x128x1xf32>
    tpu.vector_store %arg4[%c0_10, %c0_11, %c0_12], %15 {strides = array<i32>} : memref<1x128x1xf32, #tpu.memory_space<vmem>>, vector<1x128x1xf32>,
    %c0_13 = arith.constant 0 : index
    %c0_14 = arith.constant 0 : index
    %c0_15 = arith.constant 0 : index
    %16 = vector.load %arg5[%c0_13, %c0_14, %c0_15] : memref<1x128x1xf32, #tpu.memory_space<vmem>>, vector<1x128x1xf32>
    %17 = vector.shape_cast %16 : vector<1x128x1xf32> to vector<128x1xf32>
    %18 = arith.mulf %7, %7 : vector<128x256xf32>
    %cst_16 = arith.constant dense<0.000000e+00> : vector<128xf32>
    %19 = vector.multi_reduction <add>, %18, %cst_16 [1] : vector<128x256xf32> to vector<128xf32>
    %20 = vector.shape_cast %19 : vector<128xf32> to vector<128x1xf32>
    %21 = arith.addf %17, %20 : vector<128x1xf32>
    %c0_17 = arith.constant 0 : index
    %c0_18 = arith.constant 0 : index
    %c0_19 = arith.constant 0 : index
    %22 = vector.load %arg5[%c0_17, %c0_18, %c0_19] : memref<1x128x1xf32, #tpu.memory_space<vmem>>, vector<1x128x1xf32>
    %23 = vector.shape_cast %22 : vector<1x128x1xf32> to vector<128x1xf32>
    %24 = vector.shape_cast %21 : vector<128x1xf32> to vector<1x128x1xf32>
    tpu.vector_store %arg5[%c0_17, %c0_18, %c0_19], %24 {strides = array<i32>} : memref<1x128x1xf32, #tpu.memory_space<vmem>>, vector<1x128x1xf32>,
    return
  }
  func.func @transform_0(%arg0: i32, %arg1: i32) -> (i32, i32, i32) {
    %c0_i32 = arith.constant 0 : i32
    %c0_i32_0 = arith.constant 0 : i32
    return %arg0, %c0_i32, %arg1 : i32, i32, i32
  }
  func.func @transform_1(%arg0: i32, %arg1: i32) -> (i32, i32, i32) {
    %c0_i32 = arith.constant 0 : i32
    %c0_i32_0 = arith.constant 0 : i32
    %c0_i32_1 = arith.constant 0 : i32
    return %arg0, %c0_i32, %c0_i32_0 : i32, i32, i32
  }
  func.func @transform_2(%arg0: i32, %arg1: i32) -> (i32, i32, i32) {
    %c0_i32 = arith.constant 0 : i32
    %c0_i32_0 = arith.constant 0 : i32
    %c0_i32_1 = arith.constant 0 : i32
    return %arg0, %c0_i32, %c0_i32_0 : i32, i32, i32
  }
  func.func @transform_3(%arg0: i32, %arg1: i32) -> (i32, i32, i32) {
    %c0_i32 = arith.constant 0 : i32
    %c0_i32_0 = arith.constant 0 : i32
    %c0_i32_1 = arith.constant 0 : i32
    return %arg0, %c0_i32, %c0_i32_0 : i32, i32, i32
  }
}

</mosaic_0001>

<bundles_post_ra>
// kernel: tpu_custom_call.1
= control target key start
LH: loop header
LB: loop body
LE: loop exit
PB: predicated region body
PF: predicated region fallthrough
CT: control target
= control target key end

     0   :  { %9 = vsyncpa [#allocation3], 0  ;;  %s1781_s0 = inlined_call_operand.hbm [shape: bf16[4,128,512], index: 0, kind: input, shape index: {}]   ;;  %s1782_s1 = inlined_call_operand.hbm [shape: bf16[4,128,128], index: 1, kind: input, shape index: {}]   ;;  %s1783_s2 = inlined_call_operand.vmem [shape: f32[4,128,1], index: 2, kind: output, shape index: {0}]   ;;  %s1784_s3 = inlined_call_operand.vmem [shape: f32[4,128,1], index: 3, kind: output, shape index: {1}]  }
   0x1   :  { %11 = vsyncpa [#allocation3 + $0x1], 0 }
   0x2   :  { %12 = vsyncpa [#allocation5], 0 }
   0x3   :  { %14 = vsyncpa [#allocation5 + $0x1], 0  ;;  %s1322_s12 = smov 0   ;;  %s1324_s13 = smov 0  }
   0x4   :  { %s1326_s14 = smov 0   ;;  %s1328_s15 = smov 0  }
   0x5   :  { %s1330_s16 = smov 0   ;;  %s1332_s17 = smov 0  }
   0x6   :  { %s1334_s18 = smov 0   ;;  %s1336_s19 = smov 0  }
   0x7   :  { %s1338_s20 = smov 0   ;;  %s1340_s21 = smov 0  }
   0x8   :  { %s1342_s22 = smov 0  }
   0x9 LB: > { %1791 = sst [smem:[#allocation8_spill]] %s1275_s18  ;;  %s29_s23 = sadd.s32 1, %s1283_s20  ;;  %s1291_s22 = sphi %s1342_s22, %s20_s22   ;;  %s1287_s21 = sphi %s1340_s21, %s1817_s21   ;;  %s1283_s20 = sphi %s1338_s20, %s1816_s20   ;;  %s1279_s19 = sphi %s1336_s19, %s1815_s19   ;;  %s1275_s18 = sphi %s1334_s18, %s1814_s18   ;;  %s1271_s17 = sphi %s1332_s17, %s1813_s17   ;;  %s1267_s16 = sphi %s1330_s16, %s1812_s16   ;;  %s1263_s15 = sphi %s1328_s15, %s1811_s15   ;;  %s1259_s14 = sphi %s1326_s14, %s1810_s14   ;;  %s1255_s13 = sphi %s1324_s13, %s1809_s13   ;;  %s1251_s12 = sphi %s1322_s12, %s1808_s12  }
   0xa   : > { %s32_s24 = sadd.s32 1, %s1287_s21  ;;  %p30_p0 = scmp.ge.s32.totalorder %s29_s23, 2 }
   0xb   : > { %s41_s25 = sadd.s32 1, %s1271_s17  ;;  %p48_p1 = scmp.ne.s32.totalorder %s1271_s17, %s1267_s16 }
   0xc   : > { %p1788_p2 = scmp.eq.s32.totalorder %s1291_s22, 0  ;;  %s1819_s23 = smov (%p30_p0, %s29_s23), 0 }
   0xd   : > { %1792 = sst [smem:[#allocation9_spill]] %s1819_s23  ;;  %s1821_s24 = smov (!%p30_p0, %s32_s24), %s1287_s21 }
   0xe   : > { %s37_s26 = ssub.s32 %s1283_s20, %s1819_s23  ;;  %p1390_p3 = por %p1788_p2, %p48_p1 }
   0xf   : > { %p34_p4 = scmp.ge.s32.totalorder %s1821_s24, 4  ;;  %p1787_p6 = scmp.lt.s32.totalorder %s1291_s22, 8 }
  0x10   : > { %s156_s28 = sand.u32 1, %s1271_s17   ;;  %s939_s29 = sshll.u32 %s1283_s20, 1 }
  0x11   : > { %s1823_s24 = smov (%p34_p4, %s1821_s24), 0  ;;  %s938_s5 = sshll.u32 %s156_s28, 7 }
  0x12   : > { %1794 = sst [smem:[#allocation10_spill]] %s1823_s24  ;;  %s1403_s30 = ssub.s32 %s1287_s21, %s1823_s24 }
  0x13   : > { %s38_s4 = sor.u32 %s37_s26, %s1403_s30  ;;  %p65_p7 = scmp.eq.s32.totalorder %s1403_s30, 0 }
  0x14   : > { %p39_p8 = scmp.eq.s32.totalorder %s38_s4, 0  ;;  %s940_s6 = sshll.u32 %s1287_s21, 6 }
  0x15   : > { %s166_s8 = sadd.s32 %s940_s6, %s939_s29  ;;  %s160_s9 = scalar_lea.vmem [#allocation2], %s938_s5 }
  0x16   : > { %s1409_s7 = scalar_select %p39_p8, %s1271_s17, %s41_s25  }
  0x17   : > { %s169_s10 = sshll.u32 %s160_s9, 4  ;;  %s941_s11 = sshll.u32 %s166_s8, 6  ;;  %s1411_s10 = int_to_ptr.vmem [resolvable:$true] %s169_s10 }
  0x18   : > { %s1416_s24 = scalar_lea.hbm %s1781_s0, %s941_s11  ;;  %p1422_p9 = pnand %p1787_p6, %p1390_p3 }
  0x19   : > { %s1426_s26 = scalar_lea.sflag [#allocation3], %s156_s28  ;;  %s1137_s29 = scalar_lea.hbm %s1416_s24, 2048 }
  0x1a   : > { %p1138_p10 = scmp.ne.s32.totalorder %s1416_s24, %s1137_s29  ;;  %p1139_p11 = pneg %p1422_p9 }
  0x1b   : > { %s1142_s27 = scalar_lea.hbm %s1781_s0, 16384  ;;  %p1143_p0 = scmp.lt.u32.totalorder %s1416_s24, %s1781_s0 }
  0x1c   : > { %p1140_p12 = pnand %p1139_p11, %p1138_p10  ;;  %p1144_p1 = scmp.lt.u32.totalorder %s1142_s27, %s1137_s29 }
  0x1d   : > { %p1146_p4 = scmp.lt.u32.totalorder %s1137_s29, %s1416_s24 }
  0x1e   : > { %p1141_p13 = pneg %p1140_p12  ;;  %p1145_p3 = por %p1144_p1, %p1143_p0 }
  0x20   : > { %p1147_p8 = por %p1146_p4, %p1145_p3 }
  0x22   : > { %p1148_p6 = pnand %p1147_p8, %p1141_p13 }
  0x24   : > { %1151 = shalt.err (!%p1148_p6)
}
  0x25   : > { %s1152_s28 = scalar_lea.vmem %s1411_s10, 2048  ;;  %s1293_s6 = smov [#allocation2]  }
  0x26   : > { %p1153_p10 = scmp.ne.s32.totalorder %s1411_s10, %s1152_s28  ;;  %s1157_s8 = sshll.u32 %s1293_s6, 4  ;;  %s1158_s8 = int_to_ptr.vmem [resolvable:$false] %s1157_s8 }
  0x27   : > { %s1159_s9 = scalar_lea.vmem %s1158_s8, 4096  ;;  %p1160_p5 = scmp.lt.s32.totalorder %s1411_s10, %s1158_s8 }
  0x28   : > { %p1155_p12 = pnand %p1153_p10, %p1139_p11  ;;  %p1161_p0 = scmp.lt.s32.totalorder %s1159_s9, %s1152_s28 }
  0x2a   : > { %p1156_p2 = pneg %p1155_p12  ;;  %p1162_p1 = por %p1161_p0, %p1160_p5 }
  0x2c   : > { %p1163_p3 = pnand %p1162_p1, %p1156_p2 }
  0x2e   : > { %1166 = shalt.err (!%p1163_p3)
}
  0x2f   : > { %s1294_s11 = smov 256   ;;  %s1295_s29 = smov 128  }
  0x30   : > { %s1296_s18 = smov 8   ;;  %p945_p2 = scmp.ge.s32.totalorder %s1291_s22, 1 }
  0x31   : > { %1005 = dma.hbm_to_vmem [thread:$0]  (!%p1422_p9), %s1416_s24, 2048, %s1411_s10, %s1426_s26, %s1294_s11, %s1295_s29, %s1296_s18  }
  0x32   : > { %p198_p5 = scmp.lt.s32.totalorder %s1291_s22, 9  ;;  %s934_s27 = sadd.s32 4294967295, %s1291_s22  }
  0x33   : > { %p55_p11 = scmp.eq.s32.totalorder %s934_s27, 0  ;;  %s67_s4 = sadd.s32 1, %s1259_s14 }
  0x34   : > { %p1456_p6 = pnand %p945_p2, %p198_p5  ;;  %p1797_p13 = scmp.ne.s32.totalorder %s1267_s16, %s1263_s15 }
  0x35   : > { %s1465_s5 = scalar_select %p65_p7, %s1259_s14, %s67_s4  }
  0x36   : > { %p1470_p4 = por %p55_p11, %p1797_p13  ;;  %p74_p8 = scmp.ne.s32.totalorder %s1259_s14, %s1255_s13 }
  0x37   : > { %p80_p9 = scmp.ne.s32.totalorder %s1255_s13, %s1251_s12  ;;  %s179_s24 = sand.u32 1, %s1259_s14  }
  0x38   : > { %s1798_s28 = scalar_select %p1470_p4, 1, 0 }
  0x39   : > { %p1799_p10 = scmp.eq.s32.totalorder %s1291_s22, 0  ;;  %p1481_p0 = por %p80_p9, %p55_p11 }
  0x3a   : > { %s942_s25 = sshll.u32 %s179_s24, 6  ;;  %s979_s26 = sshll.u32 %s1287_s21, 10 }
  0x3b   : > { %p76_p12 = por %p74_p8, %p1799_p10  ;;  %s1489_s8 = scalar_lea.hbm %s1782_s1, %s979_s26 }
  0x3c   : > { %s1800_s10 = scalar_select %p1481_p0, 1, 0 }
  0x3d   : > { %s183_s15 = scalar_lea.vmem [#allocation4], %s942_s25  ;;  %p1801_p7 = scmp.lt.s32.totalorder %s1291_s22, 8 }
  0x3e   : > { %s190_s12 = sshll.u32 %s183_s15, 4  ;;  %s1499_s11 = scalar_lea.sflag [#allocation5], %s179_s24  ;;  %s1491_s12 = int_to_ptr.vmem [resolvable:$true] %s190_s12 }
  0x3f   : > { %p1495_p1 = pnand %p1801_p7, %p76_p12  ;;  %s1167_s29 = scalar_lea.hbm %s1489_s8, 1024 }
  0x40   : > { %p1168_p3 = scmp.ne.s32.totalorder %s1489_s8, %s1167_s29  ;;  %s1172_s4 = scalar_lea.hbm %s1782_s1, 4096 }
  0x41   : > { %p1169_p2 = pneg %p1495_p1  ;;  %p1173_p13 = scmp.lt.u32.totalorder %s1489_s8, %s1782_s1 }
  0x42   : > { %p1174_p8 = scmp.lt.u32.totalorder %s1172_s4, %s1167_s29  ;;  %p1176_p10 = scmp.lt.u32.totalorder %s1167_s29, %s1489_s8 }
  0x43   : > { %p1170_p5 = pnand %p1169_p2, %p1168_p3 }
  0x44   : > { %p1175_p9 = por %p1174_p8, %p1173_p13 }
  0x45   : > { %p1171_p11 = pneg %p1170_p5 }
  0x46   : > { %p1177_p12 = por %p1176_p10, %p1175_p9 }
  0x48   : > { %p1178_p7 = pnand %p1177_p12, %p1171_p11 }
  0x4a   : > { %1181 = shalt.err (!%p1178_p7)
}
  0x4b   : > { %s1182_s24 = scalar_lea.vmem %s1491_s12, 1024  ;;  %s1297_s6 = smov [#allocation4]  }
  0x4c   : > { %p1183_p3 = scmp.ne.s32.totalorder %s1491_s12, %s1182_s24  ;;  %s1187_s30 = sshll.u32 %s1297_s6, 4  ;;  %s1188_s30 = int_to_ptr.vmem [resolvable:$false] %s1187_s30 }
  0x4d   : > { %s1189_s15 = scalar_lea.vmem %s1188_s30, 2048  ;;  %p1190_p4 = scmp.lt.s32.totalorder %s1491_s12, %s1188_s30 }
  0x4e   : > { %p1185_p5 = pnand %p1183_p3, %p1169_p2  ;;  %p1191_p13 = scmp.lt.s32.totalorder %s1189_s15, %s1182_s24 }
  0x50   : > { %p1186_p0 = pneg %p1185_p5  ;;  %p1192_p8 = por %p1191_p13, %p1190_p4 }
  0x52   : > { %p1193_p9 = pnand %p1192_p8, %p1186_p0 }
  0x54   : > { %1196 = shalt.err (!%p1193_p9)
}
  0x55   : > { %s1298_s29 = smov 64   ;;  %s1299_s18 = smov 4  }
  0x56   : > { %1008 = dma.hbm_to_vmem [thread:$0]  (!%p1495_p1), %s1489_s8, 1024, %s1491_s12, %s1499_s11, %s1298_s29, %s1298_s29, %s1299_s18  }
  0x57   : > { %202 = sbr.rel (%p1456_p6) target bundleno = 579 (0x243), region = 28  ;;  %s204_s27 = sand.u32 (!%p1456_p6), 1, %s1267_s16  }
  0x58   : > { %s946_s4 = sshll.u32 (!%p1456_p6), %s204_s27, 7  ;;  %s205_s25 = scalar_lea.sflag (!%p1456_p6), [#allocation3], %s204_s27 }
  0x59   : > { %s1530_s26 = scalar_lea.vmem (!%p1456_p6), [#allocation2], %s946_s4  ;;  %p1803_p4 = scmp.ne.s32.totalorder (!%p1456_p6), %s1798_s28, 0 }
  0x5e   : > { %1242 = dma.done.wait (%p1803_p4), %s205_s25, 2048  }
  0x5f   : > { %1244 = vsyncadd (%p1803_p4), %s205_s25, 4294965248  ;;  %s213_s24 = sand.u32 1, %s1255_s13   ;;  %p1804_p6 = scmp.ne.s32.totalorder %s1800_s10, 0 }
  0x60   : > { %s947_s9 = sshll.u32 %s213_s24, 6  ;;  %s214_s8 = scalar_lea.sflag [#allocation5], %s213_s24 }
  0x61   : > { %s1537_s12 = scalar_lea.vmem [#allocation4], %s947_s9 }
  0x62   : > { %1246 = dma.done.wait (%p1804_p6), %s214_s8, 1024  }
  0x63   : > { %1248 = vsyncadd (%p1804_p6), %s214_s8, 4294966272  ;;  %p251_p0 = scmp.lt.s32.totalorder %s1279_s19, 3  ;;  %s1805_s18 = sld [smem:[#allocation8_spill]] }
  0x65   : > { %s1825_s19 = smov (!%p251_p0, %s1279_s19), 3 }
  0x66   : > { %s980_s23 = sshll.u32 %s1825_s19, 7 }
  0x67   : > { %s1548_s6 = scalar_lea.vmem %s1783_s2, %s980_s23  ;;  %s1553_s29 = scalar_lea.vmem %s1784_s3, %s980_s23 }
  0x69   : > { %p952_p1 = scmp.ne.s32.totalorder %s1805_s18, 0 }
  0x6a   : > { %vm266_vm0 = vcmask (!%p952_p1), 7168   ;;  %v1300_v0 = vmov (!%p952_p1), 0.0  }
  0x6b   : > { %265 = sbr.rel (%p952_p1) target bundleno = 123 (0x7b), region = 40  ;;  %267 = vst.msk [vmem:[%s1548_s6] sm:$0xff] (!%p952_p1), %vm266_vm0, %v1300_v0  ;;  %268 = vst.msk [vmem:[%s1548_s6 + $0x8] sm:$0xff] (!%p952_p1), %vm266_vm0, %v1300_v0 }
  0x6c   : > { %269 = vst.msk [vmem:[%s1548_s6 + $0x10] sm:$0xff] (!%p952_p1), %vm266_vm0, %v1300_v0  ;;  %270 = vst.msk [vmem:[%s1548_s6 + $0x18] sm:$0xff] (!%p952_p1), %vm266_vm0, %v1300_v0 }
  0x6d   : > { %271 = vst.msk [vmem:[%s1548_s6 + $0x20] sm:$0xff] (!%p952_p1), %vm266_vm0, %v1300_v0  ;;  %272 = vst.msk [vmem:[%s1548_s6 + $0x28] sm:$0xff] (!%p952_p1), %vm266_vm0, %v1300_v0 }
  0x6e   : > { %273 = vst.msk [vmem:[%s1548_s6 + $0x30] sm:$0xff] (!%p952_p1), %vm266_vm0, %v1300_v0  ;;  %274 = vst.msk [vmem:[%s1548_s6 + $0x38] sm:$0xff] (!%p952_p1), %vm266_vm0, %v1300_v0 }
  0x6f   : > { %275 = vst.msk [vmem:[%s1548_s6 + $0x40] sm:$0xff] (!%p952_p1), %vm266_vm0, %v1300_v0  ;;  %276 = vst.msk [vmem:[%s1548_s6 + $0x48] sm:$0xff] (!%p952_p1), %vm266_vm0, %v1300_v0 }
  0x70   : > { %277 = vst.msk [vmem:[%s1548_s6 + $0x50] sm:$0xff] (!%p952_p1), %vm266_vm0, %v1300_v0  ;;  %278 = vst.msk [vmem:[%s1548_s6 + $0x58] sm:$0xff] (!%p952_p1), %vm266_vm0, %v1300_v0 }
  0x71   : > { %279 = vst.msk [vmem:[%s1548_s6 + $0x60] sm:$0xff] (!%p952_p1), %vm266_vm0, %v1300_v0  ;;  %280 = vst.msk [vmem:[%s1548_s6 + $0x68] sm:$0xff] (!%p952_p1), %vm266_vm0, %v1300_v0 }
  0x72   : > { %281 = vst.msk [vmem:[%s1548_s6 + $0x70] sm:$0xff] %vm266_vm0, %v1300_v0  ;;  %282 = vst.msk [vmem:[%s1548_s6 + $0x78] sm:$0xff] %vm266_vm0, %v1300_v0 }
  0x73   : > { %283 = vst.msk [vmem:[%s1553_s29] sm:$0xff] %vm266_vm0, %v1300_v0  ;;  %284 = vst.msk [vmem:[%s1553_s29 + $0x8] sm:$0xff] %vm266_vm0, %v1300_v0 }
  0x74   : > { %285 = vst.msk [vmem:[%s1553_s29 + $0x10] sm:$0xff] %vm266_vm0, %v1300_v0  ;;  %286 = vst.msk [vmem:[%s1553_s29 + $0x18] sm:$0xff] %vm266_vm0, %v1300_v0 }
  0x75   : > { %287 = vst.msk [vmem:[%s1553_s29 + $0x20] sm:$0xff] %vm266_vm0, %v1300_v0  ;;  %288 = vst.msk [vmem:[%s1553_s29 + $0x28] sm:$0xff] %vm266_vm0, %v1300_v0 }
  0x76   : > { %289 = vst.msk [vmem:[%s1553_s29 + $0x30] sm:$0xff] %vm266_vm0, %v1300_v0  ;;  %290 = vst.msk [vmem:[%s1553_s29 + $0x38] sm:$0xff] %vm266_vm0, %v1300_v0 }
  0x77   : > { %291 = vst.msk [vmem:[%s1553_s29 + $0x40] sm:$0xff] %vm266_vm0, %v1300_v0  ;;  %292 = vst.msk [vmem:[%s1553_s29 + $0x48] sm:$0xff] %vm266_vm0, %v1300_v0 }
  0x78   : > { %293 = vst.msk [vmem:[%s1553_s29 + $0x50] sm:$0xff] %vm266_vm0, %v1300_v0  ;;  %294 = vst.msk [vmem:[%s1553_s29 + $0x58] sm:$0xff] %vm266_vm0, %v1300_v0 }
  0x79   : > { %295 = vst.msk [vmem:[%s1553_s29 + $0x60] sm:$0xff] %vm266_vm0, %v1300_v0  ;;  %296 = vst.msk [vmem:[%s1553_s29 + $0x68] sm:$0xff] %vm266_vm0, %v1300_v0 }
  0x7a   : > { %297 = vst.msk [vmem:[%s1553_s29 + $0x70] sm:$0xff] %vm266_vm0, %v1300_v0  ;;  %298 = vst.msk [vmem:[%s1553_s29 + $0x78] sm:$0xff] %vm266_vm0, %v1300_v0 }
  0x7b PF: > { %v1105_v1 = vld [vmem:[%s1530_s26 + $0x4] ss:$8 sps:$4 sm:$0xff]   ;;  %v1107_v2 = vld [vmem:[%s1530_s26] ss:$8 sps:$4 sm:$0xff]   ;;  %v1301_v3 = vmov 0   ;;  %v1133_v22 = vld [vmem:[%s1537_s12 + $0x10] sm:$0xff]  }
  0x7c   : > { %491 = vmatprep.mubr.bf16.mxu0 %v1301_v3  ;;  %531 = vmatprep.mubr.bf16.mxu1 %v1301_v3  ;;  %v1108_v4 = vld [vmem:[%s1530_s26 + $0x14] ss:$8 sps:$4 sm:$0xff]   ;;  %v1110_v5 = vld [vmem:[%s1530_s26 + $0x10] ss:$8 sps:$4 sm:$0xff]   ;;  %v1111_v6 = vld [vmem:[%s1530_s26 + $0x24] ss:$8 sps:$4 sm:$0xff]  }
  0x7d   : > { %459 = vmatprep.subr.bf16.mxu0 %v1105_v1  ;;  %982 = vmatprep.subr.bf16.mxu1 %v1105_v1  ;;  %v1113_v7 = vld [vmem:[%s1530_s26 + $0x20] ss:$8 sps:$4 sm:$0xff]   ;;  %v1114_v8 = vld [vmem:[%s1530_s26 + $0x34] ss:$8 sps:$4 sm:$0xff]   ;;  %v1116_v9 = vld [vmem:[%s1530_s26 + $0x30] ss:$8 sps:$4 sm:$0xff]  }
  0x7e   : > { %460 = vmatpush1.bf16.msra.mxu0 %v1107_v2  ;;  %990 = vmatpush1.bf16.msra.mxu1 %v1107_v2  ;;  %v1117_v10 = vld [vmem:[%s1530_s26 + $0x44] ss:$8 sps:$4 sm:$0xff]   ;;  %v1119_v11 = vld [vmem:[%s1530_s26 + $0x40] ss:$8 sps:$4 sm:$0xff]   ;;  %v1120_v12 = vld [vmem:[%s1530_s26 + $0x54] ss:$8 sps:$4 sm:$0xff]  }
  0x7f   : > { %461 = vmatprep.subr.bf16.mxu0 %v1108_v4  ;;  %983 = vmatprep.subr.bf16.mxu1 %v1108_v4  ;;  %v1122_v13 = vld [vmem:[%s1530_s26 + $0x50] ss:$8 sps:$4 sm:$0xff]   ;;  %v1123_v14 = vld [vmem:[%s1530_s26 + $0x64] ss:$8 sps:$4 sm:$0xff]   ;;  %v1125_v15 = vld [vmem:[%s1530_s26 + $0x60] ss:$8 sps:$4 sm:$0xff]  }
  0x80   : > { %v1126_v16 = vld [vmem:[%s1530_s26 + $0x74] ss:$8 sps:$4 sm:$0xff]   ;;  %v1128_v17 = vld [vmem:[%s1530_s26 + $0x70] ss:$8 sps:$4 sm:$0xff]   ;;  %v1129_v18 = vld [vmem:[%s1537_s12] sm:$0xff]   ;;  %vm652_vm1 = vcmask 7168  }
  0x81   : > { %v1130_v19 = vld [vmem:[%s1537_s12 + $0x20] sm:$0xff]   ;;  %v1131_v20 = vld [vmem:[%s1537_s12 + $0x8] sm:$0xff]   ;;  %v1134_v23 = vld [vmem:[%s1537_s12 + $0x30] sm:$0xff]  }
  0x82   : > { %462 = vmatpush1.bf16.msra.mxu0 %v1110_v5  ;;  %991 = vmatpush1.bf16.msra.mxu1 %v1110_v5  ;;  %v1132_v21 = vld [vmem:[%s1537_s12 + $0x28] sm:$0xff]   ;;  %v1135_v24 = vld [vmem:[%s1537_s12 + $0x18] sm:$0xff]  }
  0x83   : > { %463 = vmatprep.subr.bf16.mxu0 %v1111_v6  ;;  %984 = vmatprep.subr.bf16.mxu1 %v1111_v6  ;;  %v1136_v25 = vld [vmem:[%s1537_s12 + $0x38] sm:$0xff]  }
  0x86   : > { %464 = vmatpush1.bf16.msra.mxu0 %v1113_v7  ;;  %992 = vmatpush1.bf16.msra.mxu1 %v1113_v7 }
  0x87   : > { %465 = vmatprep.subr.bf16.mxu0 %v1114_v8  ;;  %985 = vmatprep.subr.bf16.mxu1 %v1114_v8 }
  0x8a   : > { %466 = vmatpush1.bf16.msra.mxu0 %v1116_v9  ;;  %993 = vmatpush1.bf16.msra.mxu1 %v1116_v9 }
  0x8b   : > { %467 = vmatprep.subr.bf16.mxu0 %v1117_v10  ;;  %986 = vmatprep.subr.bf16.mxu1 %v1117_v10 }
  0x8e   : > { %468 = vmatpush1.bf16.msra.mxu0 %v1119_v11  ;;  %994 = vmatpush1.bf16.msra.mxu1 %v1119_v11 }
  0x8f   : > { %469 = vmatprep.subr.bf16.mxu0 %v1120_v12  ;;  %987 = vmatprep.subr.bf16.mxu1 %v1120_v12 }
  0x92   : > { %470 = vmatpush1.bf16.msra.mxu0 %v1122_v13  ;;  %995 = vmatpush1.bf16.msra.mxu1 %v1122_v13 }
  0x93   : > { %471 = vmatprep.subr.bf16.mxu0 %v1123_v14  ;;  %988 = vmatprep.subr.bf16.mxu1 %v1123_v14 }
  0x96   : > { %472 = vmatpush1.bf16.msra.mxu0 %v1125_v15  ;;  %996 = vmatpush1.bf16.msra.mxu1 %v1125_v15 }
  0x97   : > { %473 = vmatprep.subr.bf16.mxu0 %v1126_v16  ;;  %989 = vmatprep.subr.bf16.mxu1 %v1126_v16 }
  0x9a   : > { %474 = vmatpush1.bf16.msra.mxu0 %v1128_v17  ;;  %997 = vmatpush1.bf16.msra.mxu1 %v1128_v17 }
  0x9d   : > { %492 = vmatmul.mubr.bf16.vlgmr.msra.gmra.mrb[0].mxu0 %v1129_v18  ;;  %532 = vmatmul.mubr.bf16.vlgmr.msra.gmra.mrb[0].mxu1 %v1130_v19 }
  0x9e   : > { %501 = vmatprep.mubr.bf16.mxu0 %v1301_v3  ;;  %541 = vmatprep.mubr.bf16.mxu1 %v1301_v3 }
  0xa5   : > { %502 = vmatmul.mubr.bf16.gmra.mrb[4].mxu0 %v1131_v20  ;;  %542 = vmatmul.mubr.bf16.gmra.mrb[4].mxu1 %v1132_v21 }
  0xa6   : > { %511 = vmatprep.mubr.bf16.mxu0 %v1301_v3  ;;  %551 = vmatprep.mubr.bf16.mxu1 %v1301_v3 }
  0xad   : > { %512 = vmatmul.mubr.bf16.gmra.mrb[8].mxu0 %v1133_v22  ;;  %552 = vmatmul.mubr.bf16.gmra.mrb[8].mxu1 %v1134_v23 }
  0xae   : > { %521 = vmatprep.mubr.bf16.mxu0 %v1301_v3  ;;  %561 = vmatprep.mubr.bf16.mxu1 %v1301_v3 }
  0xb5   : > { %522 = vmatmul.mubr.bf16.gmra.mrb[12].mxu0 %v1135_v24  ;;  %562 = vmatmul.mubr.bf16.gmra.mrb[12].mxu1 %v1136_v25 }
 0x170   : > { %v493_v26 = vpop.f32.mrb[0].mxu0  ;;  %v533_v27 = vpop.f32.mrb[0].mxu1 }
 0x171   : > { %v685_v28 = vmul.f32 %v493_v26, %v493_v26  ;;  %v701_v29 = vmul.f32 %v533_v27, %v533_v27  ;;  %v495_v30 = vpop.f32.mrb[1].mxu0  ;;  %v535_v31 = vpop.f32.mrb[1].mxu1 }
 0x172   : > { %v686_v32 = vmul.f32 %v495_v30, %v495_v30  ;;  %v702_v33 = vmul.f32 %v535_v31, %v535_v31  ;;  %v497_v34 = vpop.f32.mrb[2].mxu0  ;;  %v537_v35 = vpop.f32.mrb[2].mxu1  ;;  %v588_v36 = vadd.f32 %v495_v30, %v493_v26  ;;  %v612_v37 = vadd.f32 %v535_v31, %v533_v27 }
 0x173   : > { %v687_v38 = vmul.f32 %v497_v34, %v497_v34  ;;  %v703_v39 = vmul.f32 %v537_v35, %v537_v35  ;;  %v499_v40 = vpop.f32.mrb[3].mxu0  ;;  %v539_v41 = vpop.f32.mrb[3].mxu1 }
 0x174   : > { %v688_v42 = vmul.f32 %v499_v40, %v499_v40  ;;  %v704_v43 = vmul.f32 %v539_v41, %v539_v41  ;;  %589 = vadd.xlane.f32.xlu0 %v588_v36  ;;  %v615_v44 = vadd.f32 %v539_v41, %v537_v35  ;;  %v591_v45 = vadd.f32 %v499_v40, %v497_v34 }
 0x175   : > { %v717_v46 = vadd.f32 %v686_v32, %v685_v28  ;;  %v741_v47 = vadd.f32 %v702_v33, %v701_v29 }
 0x176   : > { %616 = vadd.xlane.f32.xlu1 %v615_v44  ;;  %v720_v48 = vadd.f32 %v688_v42, %v687_v38  ;;  %v744_v49 = vadd.f32 %v704_v43, %v703_v39 }
 0x178   : > { %613 = vadd.xlane.f32.xlu0 %v612_v37  ;;  %v503_v50 = vpop.f32.mrb[4].mxu0  ;;  %v543_v51 = vpop.f32.mrb[4].mxu1 }
 0x179   : > { %v689_v52 = vmul.f32 %v503_v50, %v503_v50  ;;  %v505_v53 = vpop.f32.mrb[5].mxu0  ;;  %v705_v54 = vmul.f32 %v543_v51, %v543_v51  ;;  %v545_v55 = vpop.f32.mrb[5].mxu1 }
 0x17a   : > { %721 = vadd.xlane.f32.xlu1 %v720_v48  ;;  %v690_v56 = vmul.f32 %v505_v53, %v505_v53  ;;  %v507_v57 = vpop.f32.mrb[6].mxu0  ;;  %v706_v58 = vmul.f32 %v545_v55, %v545_v55  ;;  %v594_v59 = vadd.f32 %v505_v53, %v503_v50  ;;  %v547_v60 = vpop.f32.mrb[6].mxu1  ;;  %v618_v61 = vadd.f32 %v545_v55, %v543_v51 }
 0x17b   : > { %v691_v62 = vmul.f32 %v507_v57, %v507_v57  ;;  %v509_v63 = vpop.f32.mrb[7].mxu0  ;;  %v707_v0 = vmul.f32 %v547_v60, %v547_v60  ;;  %v549_v1 = vpop.f32.mrb[7].mxu1 }
 0x17c   : > { %592 = vadd.xlane.f32.xlu0 %v591_v45  ;;  %v692_v2 = vmul.f32 %v509_v63, %v509_v63  ;;  %v708_v3 = vmul.f32 %v549_v1, %v549_v1  ;;  %v597_v4 = vadd.f32 %v509_v63, %v507_v57  ;;  %v621_v5 = vadd.f32 %v549_v1, %v547_v60  ;;  %v581_v60 = vld [vmem:[%s1548_s6 + $0x48] sm:$0xff]  ;;  %v580_v63 = vld [vmem:[%s1548_s6 + $0x40] sm:$0xff] }
 0x17d   : > { %v723_v6 = vadd.f32 %v690_v56, %v689_v52  ;;  %v747_v7 = vadd.f32 %v706_v58, %v705_v54  ;;  %v572_v58 = vld [vmem:[%s1548_s6] sm:$0xff] }
 0x17e   : > { %745 = vadd.xlane.f32.xlu1 %v744_v49  ;;  %v726_v8 = vadd.f32 %v692_v2, %v691_v62  ;;  %v750_v9 = vadd.f32 %v708_v3, %v707_v0  ;;  %v670_v2 = vld [vmem:[%s1553_s29 + $0x8] sm:$0xff] }
 0x180   : > { %718 = vadd.xlane.f32.xlu0 %v717_v46  ;;  %v513_v10 = vpop.f32.mrb[8].mxu0  ;;  %v553_v11 = vpop.f32.mrb[8].mxu1 }
 0x181   : > { %v693_v12 = vmul.f32 %v513_v10, %v513_v10  ;;  %v515_v13 = vpop.f32.mrb[9].mxu0  ;;  %v709_v14 = vmul.f32 %v553_v11, %v553_v11  ;;  %v555_v15 = vpop.f32.mrb[9].mxu1 }
 0x182   : > { %595 = vadd.xlane.f32.xlu1 %v594_v59  ;;  %v694_v16 = vmul.f32 %v515_v13, %v515_v13  ;;  %v517_v17 = vpop.f32.mrb[10].mxu0  ;;  %v710_v18 = vmul.f32 %v555_v15, %v555_v15  ;;  %v557_v19 = vpop.f32.mrb[10].mxu1  ;;  %v600_v20 = vadd.f32 %v515_v13, %v513_v10  ;;  %v624_v21 = vadd.f32 %v555_v15, %v553_v11  ;;  %v669_v11 = vld [vmem:[%s1553_s29] sm:$0xff] }
 0x183   : > { %v695_v22 = vmul.f32 %v517_v17, %v517_v17  ;;  %v519_v23 = vpop.f32.mrb[11].mxu0  ;;  %v711_v24 = vmul.f32 %v557_v19, %v557_v19  ;;  %v559_v25 = vpop.f32.mrb[11].mxu1 }
 0x184   : > { %742 = vadd.xlane.f32.xlu0 %v741_v47  ;;  %v696_v26 = vmul.f32 %v519_v23, %v519_v23  ;;  %v712_v27 = vmul.f32 %v559_v25, %v559_v25  ;;  %v603_v28 = vadd.f32 %v519_v23, %v517_v17  ;;  %v627_v29 = vadd.f32 %v559_v25, %v557_v19  ;;  %v677_v17 = vld [vmem:[%s1553_s29 + $0x40] sm:$0xff]  ;;  %v582_v23 = vld [vmem:[%s1548_s6 + $0x50] sm:$0xff] }
 0x185   : > { %v729_v30 = vadd.f32 %v694_v16, %v693_v12  ;;  %v753_v31 = vadd.f32 %v710_v18, %v709_v14  ;;  %v574_v14 = vld [vmem:[%s1548_s6 + $0x10] sm:$0xff] }
 0x186   : > { %598 = vadd.xlane.f32.xlu1 %v597_v4  ;;  %v732_v32 = vadd.f32 %v696_v26, %v695_v22  ;;  %v756_v33 = vadd.f32 %v712_v27, %v711_v24  ;;  %v583_v26 = vld [vmem:[%s1548_s6 + $0x58] sm:$0xff] }
 0x188   : > { %619 = vadd.xlane.f32.xlu0 %v618_v61  ;;  %v523_v34 = vpop.f32.mrb[12].mxu0  ;;  %v563_v35 = vpop.f32.mrb[12].mxu1 }
 0x189   : > { %v697_v36 = vmul.f32 %v523_v34, %v523_v34  ;;  %v525_v37 = vpop.f32.mrb[13].mxu0  ;;  %v713_v38 = vmul.f32 %v563_v35, %v563_v35  ;;  %v565_v39 = vpop.f32.mrb[13].mxu1 }
 0x18a   : > { %622 = vadd.xlane.f32.xlu1 %v621_v5  ;;  %v698_v40 = vmul.f32 %v525_v37, %v525_v37  ;;  %v527_v41 = vpop.f32.mrb[14].mxu0  ;;  %v714_v42 = vmul.f32 %v565_v39, %v565_v39  ;;  %v567_v43 = vpop.f32.mrb[14].mxu1  ;;  %v606_v44 = vadd.f32 %v525_v37, %v523_v34  ;;  %v630_v45 = vadd.f32 %v565_v39, %v563_v35  ;;  %v573_v5 = vld [vmem:[%s1548_s6 + $0x8] sm:$0xff]  ;;  %v679_v35 = vld [vmem:[%s1553_s29 + $0x50] sm:$0xff] }
 0x18b   : > { %v699_v46 = vmul.f32 %v527_v41, %v527_v41  ;;  %v529_v47 = vpop.f32.mrb[15].mxu0  ;;  %v715_v48 = vmul.f32 %v567_v43, %v567_v43  ;;  %v569_v49 = vpop.f32.mrb[15].mxu1 }
 0x18c   : > { %724 = vadd.xlane.f32.xlu0 %v723_v6  ;;  %v609_v50 = vadd.f32 %v529_v47, %v527_v41  ;;  %v700_v51 = vmul.f32 %v529_v47, %v529_v47  ;;  %v633_v52 = vadd.f32 %v569_v49, %v567_v43  ;;  %v716_v53 = vmul.f32 %v569_v49, %v569_v49  ;;  %v576_v41 = vld [vmem:[%s1548_s6 + $0x20] sm:$0xff] }
 0x18d   : > { %v735_v54 = vadd.f32 %v698_v40, %v697_v36  ;;  %v759_v55 = vadd.f32 %v714_v42, %v713_v38  ;;  %v680_v38 = vld [vmem:[%s1553_s29 + $0x58] sm:$0xff]  ;;  %v584_v47 = vld [vmem:[%s1548_s6 + $0x60] sm:$0xff] }
 0x18e   : > { %727 = vadd.xlane.f32.xlu1 %v726_v8  ;;  %v738_v56 = vadd.f32 %v700_v51, %v699_v46  ;;  %v762_v57 = vadd.f32 %v716_v53, %v715_v48  ;;  %v678_v8 = vld [vmem:[%s1553_s29 + $0x48] sm:$0xff]  ;;  %v673_v53 = vld [vmem:[%s1553_s29 + $0x20] sm:$0xff] }
 0x190   : > { %748 = vadd.xlane.f32.xlu0 %v747_v7 }
 0x192   : > { %751 = vadd.xlane.f32.xlu1 %v750_v9 }
 0x194   : > { %601 = vadd.xlane.f32.xlu0 %v600_v20  ;;  %v575_v20 = vld [vmem:[%s1548_s6 + $0x18] sm:$0xff] }
 0x196   : > { %604 = vadd.xlane.f32.xlu1 %v603_v28 }
 0x198   : > { %625 = vadd.xlane.f32.xlu0 %v624_v21 }
 0x19a   : > { %628 = vadd.xlane.f32.xlu1 %v627_v29  ;;  %v671_v29 = vld [vmem:[%s1553_s29 + $0x10] sm:$0xff] }
 0x19c   : > { %730 = vadd.xlane.f32.xlu0 %v729_v30 }
 0x19e   : > { %733 = vadd.xlane.f32.xlu1 %v732_v32  ;;  %v672_v32 = vld [vmem:[%s1553_s29 + $0x18] sm:$0xff] }
 0x1a0   : > { %754 = vadd.xlane.f32.xlu0 %v753_v31 }
 0x1a2   : > { %757 = vadd.xlane.f32.xlu1 %v756_v33 }
 0x1a4   : > { %607 = vadd.xlane.f32.xlu0 %v606_v44  ;;  %v577_v44 = vld [vmem:[%s1548_s6 + $0x28] sm:$0xff] }
 0x1a6   : > { %610 = vadd.xlane.f32.xlu1 %v609_v50  ;;  %v585_v50 = vld [vmem:[%s1548_s6 + $0x68] sm:$0xff] }
 0x1a8   : > { %631 = vadd.xlane.f32.xlu0 %v630_v45 }
 0x1aa   : > { %634 = vadd.xlane.f32.xlu1 %v633_v52 }
 0x1ac   : > { %736 = vadd.xlane.f32.xlu0 %v735_v54 }
 0x1ae   : > { %739 = vadd.xlane.f32.xlu1 %v738_v56  ;;  %v674_v56 = vld [vmem:[%s1553_s29 + $0x28] sm:$0xff] }
 0x1b0   : > { %760 = vadd.xlane.f32.xlu0 %v759_v55 }
 0x1b2   : > { %763 = vadd.xlane.f32.xlu1 %v762_v57 }
 0x201   : > { %v590_v59 = vpop.xlane.xlu0 %589 }
 0x202   : > { %v636_v61 = vadd.f32 %v590_v59, %v572_v58  ;;  %v681_v59 = vld [vmem:[%s1553_s29 + $0x60] sm:$0xff] }
 0x203   : > { %v617_v62 = vpop.xlane.xlu1 %616 }
 0x204   : > { %653 = vst.msk [vmem:[%s1548_s6] sm:$0xff] %vm652_vm1, %v636_v61  ;;  %v645_v0 = vadd.f32 %v617_v62, %v581_v60  ;;  %v682_v62 = vld [vmem:[%s1553_s29 + $0x68] sm:$0xff] }
 0x205   : > { %v614_v1 = vpop.xlane.xlu0 %613 }
 0x206   : > { %662 = vst.msk [vmem:[%s1548_s6 + $0x48] sm:$0xff] %vm652_vm1, %v645_v0  ;;  %v644_v3 = vadd.f32 %v614_v1, %v580_v63  ;;  %v578_v1 = vld [vmem:[%s1548_s6 + $0x30] sm:$0xff] }
 0x207   : > { %v722_v4 = vpop.xlane.xlu1 %721 }
 0x208   : > { %661 = vst.msk [vmem:[%s1548_s6 + $0x40] sm:$0xff] %vm652_vm1, %v644_v3  ;;  %v766_v6 = vadd.f32 %v722_v4, %v670_v2  ;;  %v579_v4 = vld [vmem:[%s1548_s6 + $0x38] sm:$0xff] }
 0x209   : > { %v593_v7 = vpop.xlane.xlu0 %592 }
 0x20a   : > { %782 = vst.msk [vmem:[%s1553_s29 + $0x8] sm:$0xff] %vm652_vm1, %v766_v6  ;;  %v637_v9 = vadd.f32 %v593_v7, %v573_v5  ;;  %v586_v7 = vld [vmem:[%s1548_s6 + $0x70] sm:$0xff] }
 0x20b   : > { %v746_v10 = vpop.xlane.xlu1 %745 }
 0x20c   : > { %654 = vst.msk [vmem:[%s1548_s6 + $0x8] sm:$0xff] %vm652_vm1, %v637_v9  ;;  %v774_v12 = vadd.f32 %v746_v10, %v678_v8  ;;  %v587_v10 = vld [vmem:[%s1548_s6 + $0x78] sm:$0xff] }
 0x20d   : > { %v719_v13 = vpop.xlane.xlu0 %718 }
 0x20e   : > { %790 = vst.msk [vmem:[%s1553_s29 + $0x48] sm:$0xff] %vm652_vm1, %v774_v12  ;;  %v765_v15 = vadd.f32 %v719_v13, %v669_v11  ;;  %v675_v13 = vld [vmem:[%s1553_s29 + $0x30] sm:$0xff] }
 0x20f   : > { %v596_v16 = vpop.xlane.xlu1 %595 }
 0x210   : > { %781 = vst.msk [vmem:[%s1553_s29] sm:$0xff] %vm652_vm1, %v765_v15  ;;  %v638_v18 = vadd.f32 %v596_v16, %v574_v14  ;;  %v676_v16 = vld [vmem:[%s1553_s29 + $0x38] sm:$0xff] }
 0x211   : > { %v743_v19 = vpop.xlane.xlu0 %742 }
 0x212   : > { %655 = vst.msk [vmem:[%s1548_s6 + $0x10] sm:$0xff] %vm652_vm1, %v638_v18  ;;  %v773_v21 = vadd.f32 %v743_v19, %v677_v17  ;;  %v683_v19 = vld [vmem:[%s1553_s29 + $0x70] sm:$0xff] }
 0x213   : > { %v599_v22 = vpop.xlane.xlu1 %598 }
 0x214   : > { %789 = vst.msk [vmem:[%s1553_s29 + $0x40] sm:$0xff] %vm652_vm1, %v773_v21  ;;  %v639_v24 = vadd.f32 %v599_v22, %v575_v20  ;;  %v684_v22 = vld [vmem:[%s1553_s29 + $0x78] sm:$0xff] }
 0x215   : > { %v620_v25 = vpop.xlane.xlu0 %619 }
 0x216   : > { %656 = vst.msk [vmem:[%s1548_s6 + $0x18] sm:$0xff] %vm652_vm1, %v639_v24  ;;  %v646_v27 = vadd.f32 %v620_v25, %v582_v23 }
 0x217   : > { %v623_v28 = vpop.xlane.xlu1 %622 }
 0x218   : > { %663 = vst.msk [vmem:[%s1548_s6 + $0x50] sm:$0xff] %vm652_vm1, %v646_v27  ;;  %v647_v30 = vadd.f32 %v623_v28, %v583_v26 }
 0x219   : > { %v725_v31 = vpop.xlane.xlu0 %724 }
 0x21a   : > { %664 = vst.msk [vmem:[%s1548_s6 + $0x58] sm:$0xff] %vm652_vm1, %v647_v30  ;;  %v767_v33 = vadd.f32 %v725_v31, %v671_v29 }
 0x21b   : > { %v728_v34 = vpop.xlane.xlu1 %727 }
 0x21c   : > { %783 = vst.msk [vmem:[%s1553_s29 + $0x10] sm:$0xff] %vm652_vm1, %v767_v33  ;;  %v768_v36 = vadd.f32 %v728_v34, %v672_v32 }
 0x21d   : > { %v749_v37 = vpop.xlane.xlu0 %748 }
 0x21e   : > { %784 = vst.msk [vmem:[%s1553_s29 + $0x18] sm:$0xff] %vm652_vm1, %v768_v36  ;;  %v775_v39 = vadd.f32 %v749_v37, %v679_v35 }
 0x21f   : > { %v752_v40 = vpop.xlane.xlu1 %751 }
 0x220   : > { %791 = vst.msk [vmem:[%s1553_s29 + $0x50] sm:$0xff] %vm652_vm1, %v775_v39  ;;  %v776_v42 = vadd.f32 %v752_v40, %v680_v38 }
 0x221   : > { %v602_v43 = vpop.xlane.xlu0 %601 }
 0x222   : > { %792 = vst.msk [vmem:[%s1553_s29 + $0x58] sm:$0xff] %vm652_vm1, %v776_v42  ;;  %v640_v45 = vadd.f32 %v602_v43, %v576_v41 }
 0x223   : > { %v605_v46 = vpop.xlane.xlu1 %604 }
 0x224   : > { %657 = vst.msk [vmem:[%s1548_s6 + $0x20] sm:$0xff] %vm652_vm1, %v640_v45  ;;  %v641_v48 = vadd.f32 %v605_v46, %v577_v44 }
 0x225   : > { %v626_v49 = vpop.xlane.xlu0 %625 }
 0x226   : > { %658 = vst.msk [vmem:[%s1548_s6 + $0x28] sm:$0xff] %vm652_vm1, %v641_v48  ;;  %v648_v51 = vadd.f32 %v626_v49, %v584_v47 }
 0x227   : > { %v629_v52 = vpop.xlane.xlu1 %628 }
 0x228   : > { %665 = vst.msk [vmem:[%s1548_s6 + $0x60] sm:$0xff] %vm652_vm1, %v648_v51  ;;  %v649_v54 = vadd.f32 %v629_v52, %v585_v50 }
 0x229   : > { %v731_v55 = vpop.xlane.xlu0 %730 }
 0x22a   : > { %666 = vst.msk [vmem:[%s1548_s6 + $0x68] sm:$0xff] %vm652_vm1, %v649_v54  ;;  %v769_v57 = vadd.f32 %v731_v55, %v673_v53 }
 0x22b   : > { %v734_v58 = vpop.xlane.xlu1 %733 }
 0x22c   : > { %785 = vst.msk [vmem:[%s1553_s29 + $0x20] sm:$0xff] %vm652_vm1, %v769_v57  ;;  %v770_v60 = vadd.f32 %v734_v58, %v674_v56 }
 0x22d   : > { %v755_v61 = vpop.xlane.xlu0 %754 }
 0x22e   : > { %786 = vst.msk [vmem:[%s1553_s29 + $0x28] sm:$0xff] %vm652_vm1, %v770_v60  ;;  %v777_v63 = vadd.f32 %v755_v61, %v681_v59 }
 0x22f   : > { %v758_v0 = vpop.xlane.xlu1 %757 }
 0x230   : > { %793 = vst.msk [vmem:[%s1553_s29 + $0x60] sm:$0xff] %vm652_vm1, %v777_v63  ;;  %v778_v2 = vadd.f32 %v758_v0, %v682_v62 }
 0x231   : > { %v608_v3 = vpop.xlane.xlu0 %607 }
 0x232   : > { %794 = vst.msk [vmem:[%s1553_s29 + $0x68] sm:$0xff] %vm652_vm1, %v778_v2  ;;  %v642_v5 = vadd.f32 %v608_v3, %v578_v1 }
 0x233   : > { %v611_v6 = vpop.xlane.xlu1 %610 }
 0x234   : > { %659 = vst.msk [vmem:[%s1548_s6 + $0x30] sm:$0xff] %vm652_vm1, %v642_v5  ;;  %v643_v8 = vadd.f32 %v611_v6, %v579_v4 }
 0x235   : > { %v632_v9 = vpop.xlane.xlu0 %631 }
 0x236   : > { %660 = vst.msk [vmem:[%s1548_s6 + $0x38] sm:$0xff] %vm652_vm1, %v643_v8  ;;  %v650_v11 = vadd.f32 %v632_v9, %v586_v7 }
 0x237   : > { %v635_v12 = vpop.xlane.xlu1 %634 }
 0x238   : > { %667 = vst.msk [vmem:[%s1548_s6 + $0x70] sm:$0xff] %vm652_vm1, %v650_v11  ;;  %v651_v14 = vadd.f32 %v635_v12, %v587_v10 }
 0x239   : > { %v737_v15 = vpop.xlane.xlu0 %736 }
 0x23a   : > { %668 = vst.msk [vmem:[%s1548_s6 + $0x78] sm:$0xff] %vm652_vm1, %v651_v14  ;;  %v771_v17 = vadd.f32 %v737_v15, %v675_v13 }
 0x23b   : > { %v740_v18 = vpop.xlane.xlu1 %739 }
 0x23c   : > { %787 = vst.msk [vmem:[%s1553_s29 + $0x30] sm:$0xff] %vm652_vm1, %v771_v17  ;;  %v772_v20 = vadd.f32 %v740_v18, %v676_v16 }
 0x23d   : > { %v761_v21 = vpop.xlane.xlu0 %760 }
 0x23e   : > { %788 = vst.msk [vmem:[%s1553_s29 + $0x38] sm:$0xff] %vm652_vm1, %v772_v20  ;;  %v779_v23 = vadd.f32 %v761_v21, %v683_v19 }
 0x23f   : > { %v764_v24 = vpop.xlane.xlu1 %763 }
 0x240   : > { %795 = vst.msk [vmem:[%s1553_s29 + $0x70] sm:$0xff] %vm652_vm1, %v779_v23  ;;  %v780_v25 = vadd.f32 %v764_v24, %v684_v22 }
 0x242   : > { %796 = vst.msk [vmem:[%s1553_s29 + $0x78] sm:$0xff] %vm652_vm1, %v780_v25 }
 0x243 PF: > { %s20_s22 = sadd.s32 1, %s1291_s22   ;;  %s1806_s10 = sld [smem:[#allocation9_spill]] }
 0x244   : > { %p17_p2 = scmp.ge.s32.totalorder %s20_s22, 10   ;;  %s1807_s27 = sld [smem:[#allocation10_spill]] }
 0x245   : > { %s1808_s12 = smov %s1255_s13  ;;  %s1809_s13 = smov %s1259_s14 }
 0x246   : > { %s1810_s14 = smov %s1465_s5  ;;  %s1811_s15 = smov %s1267_s16 }
 0x247   : > { %s1812_s16 = smov %s1271_s17  ;;  %s1813_s17 = smov %s1409_s7 }
 0x248   : > { %s1814_s18 = smov %s1283_s20  ;;  %s1815_s19 = smov %s1287_s21 }
 0x249   : > { %s1816_s20 = smov %s1806_s10  ;;  %19 = sbr.rel (!%p17_p2) target bundleno = 9 (0x9), region = 97 }
 0x24a   : > { %s1817_s21 = smov %s1807_s27 }
 0x250   :  { %834 = vsyncpa [#allocation3], 1 }
 0x251   :  { %836 = vsyncpa [#allocation3 + $0x1], 1 }
 0x252   :  { %837 = vsyncpa [#allocation5], 1 }
 0x253   :  { %839 = vsyncpa [#allocation5 + $0x1], 1 }

</bundles_post_ra>
